<compile_context>
chip_gen: v7x
topology: tpu7x:2x2x1
jax: 0.10.0
libtpu: 0.0.40
codegen_flags: <defaults>
</compile_context>

<pallas_src>
import jax
import jax.numpy as jnp
from jax.experimental import pallas as pl
from jax.experimental.pallas import tpu as pltpu


def _round_up(x: int, m: int) -> int:
    return ((x + m - 1) // m) * m


def _vmem_budgets():
    """(autosize_budget_bytes, vmem_limit_cap_bytes), per TPU generation."""
    cap = None
    try:
        cap = getattr(pltpu.get_tpu_info(), "vmem_capacity_bytes", None)
    except Exception:
        cap = None
    if cap is None:
        cap = 64 * 1024 * 1024               # assume smallest (v7x) if unknown
    if cap >= 100 * 1024 * 1024:             # v5e / v6e: 128 MiB per TensorCore
        return 80 * 1024 * 1024, 104 * 1024 * 1024
    return 28 * 1024 * 1024, 52 * 1024 * 1024  # v7x: 64 MiB per TensorCore


def _make_single_tile_kernel(cast_dtype):
    """hidden fits in one tile: no accumulator, direct lane-dense store."""
    def kernel(x_ref, w1_ref, b1_ref, w2_ref, b2_ref, o_ref):
        x = x_ref[...]
        if cast_dtype is not None:
            x = x.astype(cast_dtype)
        h = jnp.dot(x, w1_ref[...], preferred_element_type=jnp.float32)
        h = jax.nn.sigmoid(h + b1_ref[...])
        out = jnp.dot(h.astype(w2_ref.dtype), w2_ref[...],
                      preferred_element_type=jnp.float32)
        o_ref[...] = (out + b2_ref[...]).astype(o_ref.dtype)
    return kernel


def _make_multi_tile_kernel(cast_dtype):
    """hidden tiled along an inner reduction axis with an f32 accumulator."""
    def kernel(x_ref, w1_ref, b1_ref, w2_ref, b2_ref, o_ref, acc_ref):
        k = pl.program_id(1)

        @pl.when(k == 0)
        def _init():
            acc_ref[...] = jnp.zeros_like(acc_ref)

        x = x_ref[...]
        if cast_dtype is not None:
            x = x.astype(cast_dtype)
        h = jnp.dot(x, w1_ref[...], preferred_element_type=jnp.float32)
        h = jax.nn.sigmoid(h + b1_ref[...])
        acc_ref[...] += jnp.dot(h.astype(w2_ref.dtype), w2_ref[...],
                                preferred_element_type=jnp.float32)

        @pl.when(k == pl.num_programs(1) - 1)
        def _finalize():
            o_ref[...] = (acc_ref[...] + b2_ref[...]).astype(o_ref.dtype)
    return kernel


def feedforward_model(x, w1, b1, w2, b2, *, batch_tile=512, hidden_tile=None,
                      mxu_dtype=jnp.bfloat16):
    """x: (B, in); w1: (in, hidden); b1: (hidden,); w2: (hidden, out); b2: (out,).
    Returns (B, out) = sigmoid(x @ w1 + b1) @ w2 + b2.
    If mxu_dtype is not None, weights are stored (and the MXU is fed) in that
    dtype with f32 accumulation; mxu_dtype=None keeps exact f32 math."""
    B, in_dim = x.shape
    in_w, hidden = w1.shape
    hid_w, out_dim = w2.shape
    assert in_w == in_dim and hid_w == hidden
    assert b1.shape == (hidden,) and b2.shape == (out_dim,)

    w_dtype = jnp.dtype(mxu_dtype) if mxu_dtype is not None else jnp.dtype(w1.dtype)
    w_bytes = w_dtype.itemsize
    act_bytes = jnp.dtype(x.dtype).itemsize
    budget, limit_cap = _vmem_budgets()

    # ---- tile geometry (all lane dims padded to multiples of 128) ---------
    in_pad = _round_up(in_dim, 128)
    out_pad = _round_up(out_dim, 128)

    bt = max(8, _round_up(min(int(batch_tile), _round_up(B, 8)), 8))
    # v7x megacore: ensure the "parallel" batch axis has >= 2 tiles so both
    # TensorCores get work (cheap no-op cost on single-core chips).
    if B >= 64 and _round_up(B, bt) // bt < 2:
        bt = _round_up((B + 1) // 2, 8)

    def _bt_cost(bt_):  # batch-tile-dependent part of the VMEM working set
        return (2 * bt_ * in_pad * act_bytes        # x tile (double-buffered)
                + 2 * bt_ * out_pad * act_bytes     # output tile
                + bt_ * out_pad * 4                 # f32 accumulator
                + 3 * bt_ * 128 * 4)                # fc1 intermediate (min ht)
    while bt > 64 and _bt_cost(bt) > (budget * 3) // 5:
        bt = max(64, _round_up(bt // 2, 8))
    b_pad = _round_up(B, bt)

    if hidden_tile is None:
        # Largest 128-multiple hidden tile whose double-buffered working set,
        # INCLUDING the (bt, ht) f32 fc1 intermediate, fits the budget.
        fixed = (2 * bt * in_pad * act_bytes        # x tile
                 + 2 * 8 * out_pad * 4              # b2 tile
                 + 2 * bt * out_pad * act_bytes     # output tile
                 + bt * out_pad * 4)                # f32 accumulator scratch
        per_col = (2 * (in_pad + out_pad) * w_bytes  # w1 col + w2 row (dbl-buf)
                   + 2 * 8 * 4                       # b1
                   + 3 * bt * 4)                     # fc1 result + sigmoid + cast
        ht = (max(budget - fixed, 0) // per_col) // 128 * 128
        hidden_tile = max(128, ht)
    ht = min(_round_up(int(hidden_tile), 128), _round_up(hidden, 128))
    hid_pad = _round_up(hidden, ht)
    n_b, n_k = b_pad // bt, hid_pad // ht

    # ---- host-side prep (padded w1 cols / w2 rows are zero => exact) ------
    if b_pad == B and in_pad == in_dim:
        x_p = x                                     # skip the full-HBM rewrite
    else:
        x_p = jnp.pad(x, ((0, b_pad - B), (0, in_pad - in_dim)))
    w1_p = jnp.pad(w1, ((0, in_pad - in_dim), (0, hid_pad - hidden))).astype(w_dtype)
    b1_p = jnp.pad(b1, (0, hid_pad - hidden)).astype(jnp.float32).reshape(1, hid_pad)
    w2_p = jnp.pad(w2, ((0, hid_pad - hidden), (0, out_pad - out_dim))).astype(w_dtype)
    b2_p = jnp.pad(b2, (0, out_pad - out_dim)).astype(jnp.float32).reshape(1, out_pad)

    # ---- explicit VMEM limit (incl. fc1 intermediate) + cost estimate -----
    vmem_needed = (2 * bt * in_pad * act_bytes
                   + 2 * (in_pad * ht + ht * out_pad) * w_bytes
                   + 2 * 8 * (ht + out_pad) * 4
                   + 2 * bt * out_pad * act_bytes
                   + (bt * out_pad * 4 if n_k > 1 else 0)
                   + 3 * bt * ht * 4)
    vmem_limit = int(min(limit_cap,
                         max(vmem_needed + vmem_needed // 4, 16 * 1024 * 1024)))

    weight_bytes = ((w1_p.size + w2_p.size) * w_bytes
                    + (b1_p.size + b2_p.size) * 4)
    # With k innermost, every batch tile re-streams the weights when n_k > 1;
    # when n_k == 1 the weight block indices are constant and fetched once.
    weight_streams = n_b if n_k > 1 else 1
    cost = pl.CostEstimate(
        flops=2 * b_pad * (in_pad * hid_pad + hid_pad * out_pad),
        transcendentals=b_pad * hid_pad,
        bytes_accessed=int(b_pad * in_pad * act_bytes
                           + b_pad * out_pad * act_bytes
                           + weight_streams * weight_bytes),
    )

    if n_k == 1:
        # TODO(synk): pipeline_mode=pl.Buffered(1) on the constant-index weight
        # specs would additionally halve their VMEM footprint; kept at default
        # buffering here (already accounted for in the budget) for safety.
        grid_spec = pltpu.PrefetchScalarGridSpec(
            num_scalar_prefetch=0,
            grid=(n_b,),
            in_specs=[
                pl.BlockSpec((bt, in_pad), lambda i: (i, 0)),        # x
                pl.BlockSpec((in_pad, hid_pad), lambda i: (0, 0)),   # w1
                pl.BlockSpec((1, hid_pad), lambda i: (0, 0)),        # b1
                pl.BlockSpec((hid_pad, out_pad), lambda i: (0, 0)),  # w2
                pl.BlockSpec((1, out_pad), lambda i: (0, 0)),        # b2
            ],
            out_specs=pl.BlockSpec((bt, out_pad), lambda i: (i, 0)),
            scratch_shapes=[],
        )
        kernel = _make_single_tile_kernel(mxu_dtype)
        dims = ("parallel",)
    else:
        grid_spec = pltpu.PrefetchScalarGridSpec(
            num_scalar_prefetch=0,
            grid=(n_b, n_k),
            in_specs=[
                pl.BlockSpec((bt, in_pad), lambda i, k: (i, 0)),     # x
                pl.BlockSpec((in_pad, ht), lambda i, k: (0, k)),     # w1
                pl.BlockSpec((1, ht), lambda i, k: (0, k)),          # b1
                pl.BlockSpec((ht, out_pad), lambda i, k: (k, 0)),    # w2
                pl.BlockSpec((1, out_pad), lambda i, k: (0, 0)),     # b2
            ],
            out_specs=pl.BlockSpec((bt, out_pad), lambda i, k: (i, 0)),
            scratch_shapes=[pltpu.VMEM((bt, out_pad), jnp.float32)],
        )
        kernel = _make_multi_tile_kernel(mxu_dtype)
        dims = ("parallel", "arbitrary")

    out_p = pl.pallas_call(
        kernel,
        out_shape=jax.ShapeDtypeStruct((b_pad, out_pad), x.dtype),
        grid_spec=grid_spec,
        compiler_params=pltpu.CompilerParams(
            dimension_semantics=dims, vmem_limit_bytes=vmem_limit),
        cost_estimate=cost,
    )(x_p, w1_p, b1_p, w2_p, b2_p)

    if b_pad != B or out_pad != out_dim:
        return out_p[:B, :out_dim]
    return out_p


def reference(x, w1, b1, w2, b2):
    return jax.nn.sigmoid(x @ w1 + b1) @ w2 + b2


if __name__ == "__main__":
    key = jax.random.PRNGKey(0)

    # --- test 1: small shapes matching the module spec --------------------
    B, input_size, hidden_size, output_size = 8, 16, 32, 4
    kx, k1, k2, k3, k4, key = jax.random.split(key, 6)
    x = jax.random.normal(kx, (B, input_size), dtype=jnp.float32)
    bound1 = 1.0 / (input_size ** 0.5)
    bound2 = 1.0 / (hidden_size ** 0.5)
    w1 = jax.random.uniform(k1, (input_size, hidden_size),
                            minval=-bound1, maxval=bound1, dtype=jnp.float32)
    b1 = jax.random.uniform(k2, (hidden_size,),
                            minval=-bound1, maxval=bound1, dtype=jnp.float32)
    w2 = jax.random.uniform(k3, (hidden_size, output_size),
                            minval=-bound2, maxval=bound2, dtype=jnp.float32)
    b2 = jax.random.uniform(k4, (output_size,),
                            minval=-bound2, maxval=bound2, dtype=jnp.float32)

    ref = reference(x, w1, b1, w2, b2)
    # exact f32-MXU path
    out_f32 = jax.block_until_ready(
        feedforward_model(x, w1, b1, w2, b2, mxu_dtype=None))
    assert out_f32.shape == (B, output_size)
    assert jnp.allclose(out_f32, ref, atol=1e-5, rtol=1e-5)
    # default bf16-MXU fast path (f32 accumulation)
    out_bf = jax.block_until_ready(feedforward_model(x, w1, b1, w2, b2))
    assert out_bf.shape == (B, output_size)
    assert jnp.allclose(out_bf, ref, atol=5e-2, rtol=5e-2)

    # --- test 2: ragged batch + >=2 batch tiles + multi-tile hidden grid ---
    B2, in2, hid2, out2 = 300, 96, 384, 20
    kx, k1, k2, k3, k4, key = jax.random.split(key, 6)
    x2 = jax.random.normal(kx, (B2, in2), dtype=jnp.float32)
    b1_, b2_ = 1.0 / (in2 ** 0.5), 1.0 / (hid2 ** 0.5)
    w21 = jax.random.uniform(k1, (in2, hid2), minval=-b1_, maxval=b1_,
                             dtype=jnp.float32)
    bb1 = jax.random.uniform(k2, (hid2,), minval=-b1_, maxval=b1_,
                             dtype=jnp.float32)
    w22 = jax.random.uniform(k3, (hid2, out2), minval=-b2_, maxval=b2_,
                             dtype=jnp.float32)
    bb2 = jax.random.uniform(k4, (out2,), minval=-b2_, maxval=b2_,
                             dtype=jnp.float32)

    ref2 = reference(x2, w21, bb1, w22, bb2)
    # exact f32 path through the multi-k accumulator kernel
    out2_f32 = jax.block_until_ready(
        feedforward_model(x2, w21, bb1, w22, bb2,
                          hidden_tile=128, mxu_dtype=None))
    assert out2_f32.shape == (B2, out2)
    assert jnp.allclose(out2_f32, ref2, atol=1e-4, rtol=1e-4)
    # bf16-MXU path through the same multi-k grid
    out2_bf = jax.block_until_ready(
        feedforward_model(x2, w21, bb1, w22, bb2, hidden_tile=128))
    assert out2_bf.shape == (B2, out2)
    assert jnp.allclose(out2_bf, ref2, atol=5e-2, rtol=5e-2)

    print("KERNEL_OK")
</pallas_src>

<mosaic_0001>
module attributes {stable_mosaic.version = 11 : i64} {
  func.func @kernel(%arg0: i32, %arg1: memref<8x128xf32, #tpu.memory_space<vmem>>, %arg2: memref<128x128xf32, #tpu.memory_space<vmem>>, %arg3: memref<1x128xf32, #tpu.memory_space<vmem>>, %arg4: memref<128x128xf32, #tpu.memory_space<vmem>>, %arg5: memref<1x128xf32, #tpu.memory_space<vmem>>, %arg6: memref<8x128xf32, #tpu.memory_space<vmem>>) attributes {dimension_semantics = [#tpu.dimension_semantics<parallel>], iteration_bounds = array<i64: 1>, scalar_prefetch = 0 : i64, scratch_operands = 0 : i64, tpu.core_type = #tpu.core_type<tc>, window_params = [{transform_indices = @transform_0, window_bounds = array<i64: 8, 128>}, {pipeline_mode = #tpu.pipeline_mode<synchronous>, transform_indices = @transform_1, window_bounds = array<i64: 128, 128>}, {pipeline_mode = #tpu.pipeline_mode<synchronous>, transform_indices = @transform_2, window_bounds = array<i64: 1, 128>}, {pipeline_mode = #tpu.pipeline_mode<synchronous>, transform_indices = @transform_3, window_bounds = array<i64: 128, 128>}, {pipeline_mode = #tpu.pipeline_mode<synchronous>, transform_indices = @transform_4, window_bounds = array<i64: 1, 128>}, {transform_indices = @transform_5, window_bounds = array<i64: 8, 128>}]} {
    %c0 = arith.constant 0 : index
    %c0_0 = arith.constant 0 : index
    %0 = vector.load %arg1[%c0, %c0_0] : memref<8x128xf32, #tpu.memory_space<vmem>>, vector<8x128xf32>
    %c0_1 = arith.constant 0 : index
    %c0_2 = arith.constant 0 : index
    %1 = vector.load %arg2[%c0_1, %c0_2] : memref<128x128xf32, #tpu.memory_space<vmem>>, vector<128x128xf32>
    %cst = arith.constant dense<0.000000e+00> : vector<8x128xf32>
    %2 = tpu.matmul %0, %1, %cst {dimension_numbers = #tpu.dot_dimension_numbers<[1], [0], [0], [1], [0, 0, 1, 1], [], []>} : vector<8x128xf32>, vector<128x128xf32>, vector<8x128xf32> -> vector<8x128xf32>
    %c0_3 = arith.constant 0 : index
    %c0_4 = arith.constant 0 : index
    %3 = vector.load %arg3[%c0_3, %c0_4] : memref<1x128xf32, #tpu.memory_space<vmem>>, vector<1x128xf32>
    %4 = vector.broadcast %3 : vector<1x128xf32> to vector<8x128xf32>
    %5 = arith.addf %2, %4 : vector<8x128xf32>
    %6 = arith.negf %5 : vector<8x128xf32>
    %7 = math.exp %6 : vector<8x128xf32>
    %cst_5 = arith.constant 1.000000e+00 : f32
    %8 = vector.broadcast %cst_5 : f32 to vector<8x128xf32>
    %9 = arith.addf %8, %7 : vector<8x128xf32>
    %10 = arith.divf %8, %9 : vector<8x128xf32>
    %c0_6 = arith.constant 0 : index
    %c0_7 = arith.constant 0 : index
    %11 = vector.load %arg4[%c0_6, %c0_7] : memref<128x128xf32, #tpu.memory_space<vmem>>, vector<128x128xf32>
    %cst_8 = arith.constant dense<0.000000e+00> : vector<8x128xf32>
    %12 = tpu.matmul %10, %11, %cst_8 {dimension_numbers = #tpu.dot_dimension_numbers<[1], [0], [0], [1], [0, 0, 1, 1], [], []>} : vector<8x128xf32>, vector<128x128xf32>, vector<8x128xf32> -> vector<8x128xf32>
    %c0_9 = arith.constant 0 : index
    %c0_10 = arith.constant 0 : index
    %13 = vector.load %arg5[%c0_9, %c0_10] : memref<1x128xf32, #tpu.memory_space<vmem>>, vector<1x128xf32>
    %14 = vector.broadcast %13 : vector<1x128xf32> to vector<8x128xf32>
    %15 = arith.addf %12, %14 : vector<8x128xf32>
    %c0_11 = arith.constant 0 : index
    %c0_12 = arith.constant 0 : index
    %16 = vector.load %arg6[%c0_11, %c0_12] : memref<8x128xf32, #tpu.memory_space<vmem>>, vector<8x128xf32>
    tpu.vector_store %arg6[%c0_11, %c0_12], %15 {strides = array<i32>} : memref<8x128xf32, #tpu.memory_space<vmem>>, vector<8x128xf32>,
    return
  }
  func.func @transform_0(%arg0: i32) -> (i32, i32) {
    %c0_i32 = arith.constant 0 : i32
    %c0_i32_0 = arith.constant 0 : i32
    return %arg0, %c0_i32 : i32, i32
  }
  func.func @transform_1(%arg0: i32) -> (i32, i32) {
    %c0_i32 = arith.constant 0 : i32
    %c0_i32_0 = arith.constant 0 : i32
    %c0_i32_1 = arith.constant 0 : i32
    return %c0_i32, %c0_i32_0 : i32, i32
  }
  func.func @transform_2(%arg0: i32) -> (i32, i32) {
    %c0_i32 = arith.constant 0 : i32
    %c0_i32_0 = arith.constant 0 : i32
    %c0_i32_1 = arith.constant 0 : i32
    return %c0_i32, %c0_i32_0 : i32, i32
  }
  func.func @transform_3(%arg0: i32) -> (i32, i32) {
    %c0_i32 = arith.constant 0 : i32
    %c0_i32_0 = arith.constant 0 : i32
    %c0_i32_1 = arith.constant 0 : i32
    return %c0_i32, %c0_i32_0 : i32, i32
  }
  func.func @transform_4(%arg0: i32) -> (i32, i32) {
    %c0_i32 = arith.constant 0 : i32
    %c0_i32_0 = arith.constant 0 : i32
    %c0_i32_1 = arith.constant 0 : i32
    return %c0_i32, %c0_i32_0 : i32, i32
  }
  func.func @transform_5(%arg0: i32) -> (i32, i32) {
    %c0_i32 = arith.constant 0 : i32
    %c0_i32_0 = arith.constant 0 : i32
    return %arg0, %c0_i32 : i32, i32
  }
}

</mosaic_0001>

<bundles_post_ra>
// kernel: tpu_custom_call.1
= control target key start
LH: loop header
LB: loop body
LE: loop exit
PB: predicated region body
PF: predicated region fallthrough
CT: control target
= control target key end

     0   :  { %10 = vsyncpa [#allocation3], 0  ;;  %s647_s0 = inlined_call_operand.hbm [shape: f32[8,128], index: 0, kind: input, shape index: {}]   ;;  %s648_s1 = inlined_call_operand.hbm [shape: f32[128,128], index: 1, kind: input, shape index: {}]   ;;  %s649_s2 = inlined_call_operand.vmem [shape: f32[1,128], index: 2, kind: input, shape index: {}]   ;;  %s650_s3 = inlined_call_operand.hbm [shape: f32[128,128], index: 3, kind: input, shape index: {}]   ;;  %s651_s4 = inlined_call_operand.vmem [shape: f32[1,128], index: 4, kind: input, shape index: {}]   ;;  %s652_s5 = inlined_call_operand.hbm [shape: f32[8,128], index: 5, kind: output, shape index: {}]  }
   0x1   :  { %11 = vsyncpa [#allocation6], 0 }
   0x2   :  { %12 = vsyncpa [#allocation4], 0  ;;  %s532_s18 = smov [#allocation5]   ;;  %s438_s22 = scalar_lea.hbm %s648_s1, 2048 }
   0x3   :  { %s28_s19 = sshll.u32 %s532_s18, 4  ;;  %p439_p0 = scmp.ne.s32.totalorder %s648_s1, %s438_s22  ;;  %s29_s19 = int_to_ptr.vmem [resolvable:$true] %s28_s19 }
   0x4   :  { %p442_p1 = scmp.lt.u32.totalorder %s438_s22, %s648_s1 }
   0x6   :  { %p444_p2 = pnand %p442_p1, %p439_p0 }
   0x8   :  { %447 = shalt.err (!%p444_p2)
}
   0x9   :  { %s448_s27 = scalar_lea.vmem %s29_s19, 2048  ;;  %p453_p4 = scmp.lt.s32.totalorder %s29_s19, %s29_s19 }
   0xa   :  { %p449_p3 = scmp.ne.s32.totalorder %s29_s19, %s448_s27  ;;  %p454_p5 = scmp.lt.s32.totalorder %s448_s27, %s448_s27 }
   0xc   :  { %p455_p6 = por %p454_p5, %p453_p4 }
   0xe   :  { %p456_p7 = pnand %p455_p6, %p449_p3 }
  0x10   :  { %459 = shalt.err (!%p456_p7)
}
  0x11   :  { %s533_s28 = smov 128   ;;  %s534_s29 = smov 8  }
  0x12   :  { %34 = dma.hbm_to_vmem [thread:$0]  %s648_s1, 2048, %s29_s19, [#allocation6], %s533_s28, %s533_s28, %s534_s29  }
  0x13   :  { %s535_s7 = smov [#allocation2]   ;;  %s536_s9 = smov [#allocation7]  }
  0x14   :  { %s19_s8 = sshll.u32 %s535_s7, 4  ;;  %s42_s10 = sshll.u32 %s536_s9, 4  ;;  %s20_s8 = int_to_ptr.vmem [resolvable:$true] %s19_s8  ;;  %s43_s10 = int_to_ptr.vmem [resolvable:$true] %s42_s10 }
  0x15   :  { %s460_s13 = scalar_lea.hbm %s647_s0, 128 }
  0x16   :  { %p461_p8 = scmp.ne.s32.totalorder %s647_s0, %s460_s13  ;;  %p464_p9 = scmp.lt.u32.totalorder %s460_s13, %s647_s0 }
  0x18   :  { %p466_p10 = pnand %p464_p9, %p461_p8 }
  0x1a   :  { %469 = shalt.err (!%p466_p10)
}
  0x1b   :  { %s470_s1 = scalar_lea.vmem %s20_s8, 128  ;;  %p475_p12 = scmp.lt.s32.totalorder %s20_s8, %s20_s8 }
  0x1c   :  { %p471_p11 = scmp.ne.s32.totalorder %s20_s8, %s470_s1  ;;  %p476_p13 = scmp.lt.s32.totalorder %s470_s1, %s470_s1 }
  0x1e   :  { %p477_p0 = por %p476_p13, %p475_p12 }
  0x20   :  { %p478_p1 = pnand %p477_p0, %p471_p11 }
  0x22   :  { %481 = shalt.err (!%p478_p1)
}
  0x23   :  { %22 = dma.hbm_to_vmem [thread:$0]  %s647_s0, 128, %s20_s8, [#allocation3]  }
  0x24   :  { %s482_s22 = scalar_lea.hbm %s650_s3, 2048 }
  0x25   :  { %p483_p2 = scmp.ne.s32.totalorder %s650_s3, %s482_s22  ;;  %p486_p3 = scmp.lt.u32.totalorder %s482_s22, %s650_s3 }
  0x27   :  { %p488_p4 = pnand %p486_p3, %p483_p2 }
  0x29   :  { %491 = shalt.err (!%p488_p4)
}
  0x2a   :  { %s492_s27 = scalar_lea.vmem %s43_s10, 2048  ;;  %p497_p6 = scmp.lt.s32.totalorder %s43_s10, %s43_s10 }
  0x2b   :  { %p493_p5 = scmp.ne.s32.totalorder %s43_s10, %s492_s27  ;;  %p498_p7 = scmp.lt.s32.totalorder %s492_s27, %s492_s27 }
  0x2d   :  { %p499_p8 = por %p498_p7, %p497_p6 }
  0x2f   :  { %p500_p9 = pnand %p499_p8, %p493_p5 }
  0x31   :  { %503 = shalt.err (!%p500_p9)
}
  0x32   :  { %48 = dma.hbm_to_vmem [thread:$0]  %s650_s3, 2048, %s43_s10, [#allocation6], %s533_s28, %s533_s28, %s534_s29  }
  0x33   :  { %526 = dma.done.wait [#allocation3], 128  }
  0x34   :  { %527 = vsyncadd [#allocation3], 4294967168 }
  0x35   :  { %528 = dma.done.wait [#allocation6], 4096  }
  0x36   :  { %529 = vsyncadd [#allocation6], 4294963200  ;;  %v537_v0 = vmov 0.0|0.0   ;;  %vm538_vm0 = vmmov 0   ;;  %v539_v1 = vmov 0.0   ;;  %v61_v2 = vld [vmem:[#allocation5] sm:$0xff] }
  0x37   :  { %377 = vmatprep.subr.bf16.mxu0 %v537_v0  ;;  %339 = vmatprep.mubr.msk.f32.mxu0 %vm538_vm0, %v539_v1  ;;  %v62_v3 = vld [vmem:[#allocation5 + $0x8] sm:$0xff]  ;;  %v63_v4 = vld [vmem:[#allocation5 + $0x10] sm:$0xff]  ;;  %v64_v6 = vld [vmem:[#allocation5 + $0x18] sm:$0xff]  ;;  %s540_s7 = smov [#allocation8]  }
  0x38   :  { %401 = vmatprep.subr.bf16.mxu1 %v537_v0  ;;  %374 = vmatprep.mubr.msk.f32.mxu1 %vm538_vm0, %v539_v1  ;;  %v378_v5 = vpack.c.bf16 %v62_v3, %v61_v2  ;;  %v381_v7 = vpack.c.bf16 %v64_v6, %v63_v4  ;;  %v65_v8 = vld [vmem:[#allocation5 + $0x20] sm:$0xff]  ;;  %v66_v9 = vld [vmem:[#allocation5 + $0x28] sm:$0xff]  ;;  %v67_v14 = vld [vmem:[#allocation5 + $0x30] sm:$0xff]  ;;  %s260_s8 = sshll.u32 %s540_s7, 4  ;;  %s261_s8 = int_to_ptr.vmem [resolvable:$true] %s260_s8 }
  0x39   :  { %v160_v10 = vld [vmem:[#allocation7] sm:$0xff]  ;;  %v161_v11 = vld [vmem:[#allocation7 + $0x8] sm:$0xff]  ;;  %v384_v12 = vpack.c.bf16 %v66_v9, %v65_v8  ;;  %v68_v15 = vld [vmem:[#allocation5 + $0x38] sm:$0xff]  ;;  %p509_p11 = scmp.lt.s32.totalorder %s261_s8, %s261_s8 }
  0x3a   :  { %379 = vmatpush3.bf16.msra.mxu0 %v378_v5  ;;  %v402_v13 = vpack.c.bf16 %v161_v11, %v160_v10  ;;  %v387_v16 = vpack.c.bf16 %v68_v15, %v67_v14  ;;  %v69_v17 = vld [vmem:[#allocation5 + $0x40] sm:$0xff]  ;;  %v70_v18 = vld [vmem:[#allocation5 + $0x48] sm:$0xff]  ;;  %v71_v20 = vld [vmem:[#allocation5 + $0x50] sm:$0xff] }
  0x3b   :  { %380 = vmatprep.subr.bf16.mxu0 %v537_v0  ;;  %v390_v19 = vpack.c.bf16 %v70_v18, %v69_v17  ;;  %v72_v21 = vld [vmem:[#allocation5 + $0x58] sm:$0xff]  ;;  %v73_v23 = vld [vmem:[#allocation5 + $0x60] sm:$0xff]  ;;  %v74_v24 = vld [vmem:[#allocation5 + $0x68] sm:$0xff] }
  0x3c   :  { %403 = vmatpush3.bf16.msra.mxu1 %v402_v13  ;;  %v393_v22 = vpack.c.bf16 %v72_v21, %v71_v20  ;;  %v396_v25 = vpack.c.bf16 %v74_v24, %v73_v23  ;;  %v75_v26 = vld [vmem:[#allocation5 + $0x70] sm:$0xff]  ;;  %v76_v27 = vld [vmem:[#allocation5 + $0x78] sm:$0xff]  ;;  %v164_v33 = vld [vmem:[#allocation7 + $0x20] sm:$0xff] }
  0x3d   :  { %404 = vmatprep.subr.bf16.mxu1 %v537_v0  ;;  %v399_v28 = vpack.c.bf16 %v76_v27, %v75_v26  ;;  %v60_v29 = vld [vmem:[#allocation2] sm:$0xff]  ;;  %v162_v30 = vld [vmem:[#allocation7 + $0x10] sm:$0xff]  ;;  %v165_v34 = vld [vmem:[#allocation7 + $0x28] sm:$0xff] }
  0x3e   :  { %382 = vmatpush3.bf16.msra.mxu0 %v381_v7  ;;  %v163_v31 = vld [vmem:[#allocation7 + $0x18] sm:$0xff]  ;;  %v408_v35 = vpack.c.bf16 %v165_v34, %v164_v33  ;;  %v166_v36 = vld [vmem:[#allocation7 + $0x30] sm:$0xff]  ;;  %v168_v39 = vld [vmem:[#allocation7 + $0x40] sm:$0xff] }
  0x3f   :  { %383 = vmatprep.subr.bf16.mxu0 %v537_v0  ;;  %v405_v32 = vpack.c.bf16 %v163_v31, %v162_v30  ;;  %v167_v37 = vld [vmem:[#allocation7 + $0x38] sm:$0xff]  ;;  %v169_v40 = vld [vmem:[#allocation7 + $0x48] sm:$0xff]  ;;  %v170_v42 = vld [vmem:[#allocation7 + $0x50] sm:$0xff] }
  0x40   :  { %v411_v38 = vpack.c.bf16 %v167_v37, %v166_v36  ;;  %v414_v41 = vpack.c.bf16 %v169_v40, %v168_v39  ;;  %v171_v43 = vld [vmem:[#allocation7 + $0x58] sm:$0xff]  ;;  %v172_v45 = vld [vmem:[#allocation7 + $0x60] sm:$0xff]  ;;  %v173_v46 = vld [vmem:[#allocation7 + $0x68] sm:$0xff] }
  0x41   :  { %406 = vmatpush3.bf16.msra.mxu1 %v405_v32  ;;  %v417_v44 = vpack.c.bf16 %v171_v43, %v170_v42  ;;  %v420_v47 = vpack.c.bf16 %v173_v46, %v172_v45  ;;  %v174_v48 = vld [vmem:[#allocation7 + $0x70] sm:$0xff]  ;;  %v175_v49 = vld [vmem:[#allocation7 + $0x78] sm:$0xff] }
  0x42   :  { %385 = vmatpush3.bf16.msra.mxu0 %v384_v12  ;;  %407 = vmatprep.subr.bf16.mxu1 %v537_v0  ;;  %v423_v50 = vpack.c.bf16 %v175_v49, %v174_v48  ;;  %v270_v51 = vld [vmem:[%s649_s2] ss:$0 sm:$0xff]  ;;  %s504_s2 = scalar_lea.vmem %s261_s8, 128 }
  0x43   :  { %386 = vmatprep.subr.bf16.mxu0 %v537_v0  ;;  %v272_v59 = vld [vmem:[%s651_s4] ss:$0 sm:$0xff]  ;;  %p505_p10 = scmp.ne.s32.totalorder %s261_s8, %s504_s2  ;;  %p510_p12 = scmp.lt.s32.totalorder %s504_s2, %s504_s2 }
  0x45   :  { %409 = vmatpush3.bf16.msra.mxu1 %v408_v35  ;;  %p511_p13 = por %p510_p12, %p509_p11 }
  0x46   :  { %388 = vmatpush3.bf16.msra.mxu0 %v387_v16  ;;  %410 = vmatprep.subr.bf16.mxu1 %v537_v0 }
  0x47   :  { %389 = vmatprep.subr.bf16.mxu0 %v537_v0  ;;  %p512_p0 = pnand %p511_p13, %p505_p10 }
  0x49   :  { %412 = vmatpush3.bf16.msra.mxu1 %v411_v38 }
  0x4a   :  { %391 = vmatpush3.bf16.msra.mxu0 %v390_v19  ;;  %413 = vmatprep.subr.bf16.mxu1 %v537_v0 }
  0x4b   :  { %392 = vmatprep.subr.bf16.mxu0 %v537_v0 }
  0x4d   :  { %415 = vmatpush3.bf16.msra.mxu1 %v414_v41 }
  0x4e   :  { %394 = vmatpush3.bf16.msra.mxu0 %v393_v22  ;;  %416 = vmatprep.subr.bf16.mxu1 %v537_v0 }
  0x4f   :  { %395 = vmatprep.subr.bf16.mxu0 %v537_v0 }
  0x51   :  { %418 = vmatpush3.bf16.msra.mxu1 %v417_v44 }
  0x52   :  { %397 = vmatpush3.bf16.msra.mxu0 %v396_v25  ;;  %419 = vmatprep.subr.bf16.mxu1 %v537_v0 }
  0x53   :  { %398 = vmatprep.subr.bf16.mxu0 %v537_v0 }
  0x55   :  { %421 = vmatpush3.bf16.msra.mxu1 %v420_v47 }
  0x56   :  { %400 = vmatpush3.bf16.msra.mxu0 %v399_v28  ;;  %422 = vmatprep.subr.bf16.mxu1 %v537_v0 }
  0x59   :  { %340 = vmatmul.mubr.f32.vlgmr.msra.gmra.mrb[0].mxu0 %v60_v29  ;;  %424 = vmatpush3.bf16.msra.mxu1 %v423_v50 }
 0x12c   :  { %v150_v52 = vpop.f32.mrb[0].mxu0 }
 0x12d   :  { %v151_v53 = vadd.f32 %v270_v51, %v150_v52  ;;  %v341_v54 = vpop.f32.mrb[1].mxu0 }
 0x12f   :  { %v271_v55 = vmul.f32 -1.442695, %v151_v53 }
 0x131   :  { %434 = vpow2.f32 %v271_v55 }
 0x13b   :  { %v435_v56 = vpop.eup %434 }
 0x13c   :  { %v157_v57 = vadd.f32 1.0, %v435_v56 }
 0x13e   :  { %436 = vrcp.f32 %v157_v57 }
 0x148   :  { %v437_v58 = vpop.eup %436 }
 0x149   :  { %375 = vmatmul.mubr.f32.vlgmr.msra.gmra.mrb[0].mxu1 %v437_v58 }
 0x21c   :  { %v249_v60 = vpop.f32.mrb[0].mxu1 }
 0x21d   :  { %v250_v61 = vadd.f32 %v272_v59, %v249_v60  ;;  %v376_v62 = vpop.f32.mrb[1].mxu1 }
 0x21f   :  { %253 = vst [vmem:[#allocation8] sm:$0xff] %v250_v61 }
 0x220   :  { %515 = shalt.err (!%p512_p0)
}
 0x221   :  { %s516_s11 = scalar_lea.hbm %s652_s5, 128 }
 0x222   :  { %p517_p1 = scmp.ne.s32.totalorder %s652_s5, %s516_s11  ;;  %p520_p2 = scmp.lt.u32.totalorder %s516_s11, %s652_s5 }
 0x224   :  { %p522_p3 = pnand %p520_p2, %p517_p1 }
 0x226   :  { %525 = shalt.err (!%p522_p3)
}
 0x227   :  { %263 = dma.vmem_to_hbm [thread:$0]  %s261_s8, 128, %s652_s5, [#allocation4]  }
 0x228   :  { %530 = dma.done.wait [#allocation4], 128  }
 0x229   :  { %531 = vsyncadd [#allocation4], 4294967168 }
 0x22a   :  { %267 = vsyncpa [#allocation3], 1 }
 0x22b   :  { %268 = vsyncpa [#allocation6], 1 }
 0x22c   :  { %269 = vsyncpa [#allocation4], 1 }

</bundles_post_ra>
